<compile_context>
chip_gen: v5e
topology: v5e:2x2
jax: 0.10.0
libtpu: 0.0.40
codegen_flags: <defaults>
</compile_context>

<pallas_src>
import functools

import jax
import jax.numpy as jnp
from jax.experimental import pallas as pl
from jax.experimental.pallas import tpu as pltpu


def _round_up(x, m):
    return (x + m - 1) // m * m


def _vmem_capacity_bytes():
    """Physical VMEM per TensorCore; conservative default if the query fails."""
    try:
        info = pltpu.get_tpu_info()
        return int(getattr(info, "vmem_capacity_bytes", 64 * 1024 * 1024))
    except Exception:
        return 64 * 1024 * 1024


def _semantic_map_kernel(x_ref, w1_ref, w2_ref, o_ref, *, bt, compute_dtype):
    # x_ref:  (bt, C_in, TN)  NCHW-native channel x pixel slab (HBM/input dtype)
    # w1_ref: (C_mid, C_in)   conv1 weight (compute dtype), resident in VMEM
    # w2_ref: (C_in, C_mid)   conv2 weight (compute dtype), resident in VMEM
    # o_ref:  (bt, C_in, TN)
    w1 = w1_ref[...]
    w2 = w2_ref[...]
    for b in range(bt):  # static unroll over the batch tile (weights reused)
        # In-register cast: no wrapper-side astype -> no extra HBM traffic.
        x = x_ref[b].astype(compute_dtype)                         # (C_in, TN)
        h = jnp.dot(w1, x, preferred_element_type=jnp.float32)     # (C_mid, TN)
        h = jnp.maximum(h, 0.0)                                     # ReLU in f32
        y = jnp.dot(w2, h.astype(compute_dtype),
                    preferred_element_type=jnp.float32)             # (C_in, TN)
        o_ref[b] = y.astype(o_ref.dtype)


@functools.partial(jax.jit, static_argnames=("tn", "bt", "compute_dtype"))
def semantic_map_forward(x_nchw, w1_conv, w2_conv, *, tn=None, bt=None,
                         compute_dtype=jnp.bfloat16):
    """Forward pass of SemanticMap.

    x_nchw:  (B, C_in, H, W)            (or a list whose first element is it)
    w1_conv: (C_mid, C_in, 1, 1)        PyTorch Conv2d weight layout, bias=False
    w2_conv: (C_in, C_mid, 1, 1)
    returns: (B, C_in, H, W) in x_nchw.dtype
    """
    # Mirror the module's `if isinstance(inputs, list)` behavior.
    if isinstance(x_nchw, (list, tuple)):
        x_nchw = x_nchw[0]

    B, C_in, H, W = x_nchw.shape
    C_mid = w1_conv.shape[0]
    out_dtype = x_nchw.dtype
    HW = H * W

    # ---- generation-dependent tuning (trace-time) --------------------------
    vmem_cap = _vmem_capacity_bytes()
    narrow = jnp.dtype(compute_dtype).itemsize <= 2          # bf16 operands
    if vmem_cap >= 100 * 1024 * 1024:                         # v5e / v6e (128 MiB)
        tn_target = 2048 if narrow else 1024
        vmem_limit = 96 * 1024 * 1024
    else:                                                     # v7x (64 MiB) / unknown
        tn_target = 1024 if narrow else 512
        vmem_limit = 48 * 1024 * 1024
    if tn is not None:
        tn_target = int(tn)

    # Pixel (lane) tile: multiple of 128, no bigger than needed.
    tn_eff = min(tn_target, _round_up(HW, 128))
    tn_eff = max(128, _round_up(tn_eff, 128))

    # Fold a batch sub-tile per grid step when one pixel tile is small, so the
    # resident weights amortize over several images (cuts per-step overhead).
    if bt is None:
        bt_eff = max(1, min(B, tn_target // tn_eff))
    else:
        bt_eff = max(1, min(B, int(bt)))

    # Free, contiguous reshape — no transpose, no padding copy.
    x3 = x_nchw.reshape(B, C_in, HW)

    # Conv2d(out, in, 1, 1) weights are already in LHS-matmul form (tiny cast).
    w1 = w1_conv.reshape(C_mid, C_in).astype(compute_dtype)
    w2 = w2_conv.reshape(C_in, C_mid).astype(compute_dtype)

    # Pixel axis leads the grid (balanced 2-TC split on v7x). Ragged HW / B are
    # handled by Pallas partial blocks: every output column depends only on its
    # own input column, so garbage in OOB lanes never contaminates valid data,
    # and OOB stores are masked.
    grid = (pl.cdiv(HW, tn_eff), pl.cdiv(B, bt_eff))

    isz_x = jnp.dtype(x3.dtype).itemsize
    isz_o = jnp.dtype(out_dtype).itemsize
    isz_w = jnp.dtype(compute_dtype).itemsize
    cost = pl.CostEstimate(
        flops=4 * B * HW * C_in * C_mid,
        transcendentals=0,
        bytes_accessed=B * C_in * HW * (isz_x + isz_o) + 2 * C_in * C_mid * isz_w,
    )

    kernel = functools.partial(_semantic_map_kernel, bt=bt_eff,
                               compute_dtype=compute_dtype)

    out3 = pl.pallas_call(
        kernel,
        out_shape=jax.ShapeDtypeStruct((B, C_in, HW), out_dtype),
        grid_spec=pltpu.PrefetchScalarGridSpec(
            num_scalar_prefetch=0,
            grid=grid,
            in_specs=[
                pl.BlockSpec((bt_eff, C_in, tn_eff), lambda j, b: (b, 0, j)),
                # Constant index_map -> fetched once; single-buffer to save VMEM.
                pl.BlockSpec((C_mid, C_in), lambda j, b: (0, 0),
                             pipeline_mode=pl.Buffered(1)),
                pl.BlockSpec((C_in, C_mid), lambda j, b: (0, 0),
                             pipeline_mode=pl.Buffered(1)),
            ],
            out_specs=pl.BlockSpec((bt_eff, C_in, tn_eff), lambda j, b: (b, 0, j)),
        ),
        compiler_params=pltpu.CompilerParams(
            dimension_semantics=("parallel", "parallel"),
            vmem_limit_bytes=vmem_limit,
        ),
        cost_estimate=cost,
    )(x3, w1, w2)

    return out3.reshape(B, C_in, H, W)


def reference_forward(x_nchw, w1_conv, w2_conv):
    """Pure-JAX reference matching the PyTorch module semantics (f32)."""
    B, C_in, H, W = x_nchw.shape
    C_mid = w1_conv.shape[0]
    x = jnp.transpose(x_nchw, (0, 2, 3, 1)).reshape(-1, C_in)
    h = jnp.maximum(x @ w1_conv.reshape(C_mid, C_in).T, 0.0)
    y = h @ w2_conv.reshape(C_in, C_mid).T
    return jnp.transpose(y.reshape(B, H, W, C_in), (0, 3, 1, 2))


if __name__ == "__main__":
    # Small shapes consistent with the module (reduction=4).
    B, C_in, H, W = 2, 128, 16, 16
    reduction = 4
    C_mid = C_in // reduction  # 32

    key = jax.random.PRNGKey(0)
    kx, k1, k2 = jax.random.split(key, 3)

    x = jax.random.normal(kx, (B, C_in, H, W), dtype=jnp.float32)
    w1_conv = jax.random.normal(k1, (C_mid, C_in, 1, 1), jnp.float32) * (1.0 / C_in ** 0.5)
    w2_conv = jax.random.normal(k2, (C_in, C_mid, 1, 1), jnp.float32) * (1.0 / C_mid ** 0.5)

    ref = reference_forward(x, w1_conv, w2_conv)

    # f32-operand path: tight tolerance vs reference.
    out_f32 = jax.block_until_ready(
        semantic_map_forward(x, w1_conv, w2_conv, compute_dtype=jnp.float32))
    assert out_f32.shape == (B, C_in, H, W)
    assert jnp.allclose(out_f32, ref, atol=1e-4, rtol=1e-4), "f32 mismatch vs reference"

    # Default path: bf16 MXU operands (cast in-kernel), f32 accumulation/ReLU.
    out_bf16 = jax.block_until_ready(semantic_map_forward(x, w1_conv, w2_conv))
    assert out_bf16.shape == (B, C_in, H, W)
    max_err = float(jnp.max(jnp.abs(out_bf16 - ref)))
    assert max_err < 0.15, f"bf16 max abs err too large: {max_err}"

    # Ragged spatial size (H*W = 100, not a multiple of 128): pad-free partial
    # last pixel block path.
    xr = jax.random.normal(kx, (1, C_in, 10, 10), dtype=jnp.float32)
    out_r = jax.block_until_ready(
        semantic_map_forward(xr, w1_conv, w2_conv, compute_dtype=jnp.float32))
    ref_r = reference_forward(xr, w1_conv, w2_conv)
    assert out_r.shape == (1, C_in, 10, 10)
    assert jnp.allclose(out_r, ref_r, atol=1e-4, rtol=1e-4), "ragged HW mismatch"

    # Ragged batch with an explicit batch tile: partial batch block path.
    xb = jax.random.normal(k1, (3, C_in, H, W), dtype=jnp.float32)
    out_b = jax.block_until_ready(
        semantic_map_forward(xb, w1_conv, w2_conv, tn=256, bt=2,
                             compute_dtype=jnp.float32))
    ref_b = reference_forward(xb, w1_conv, w2_conv)
    assert out_b.shape == (3, C_in, H, W)
    assert jnp.allclose(out_b, ref_b, atol=1e-4, rtol=1e-4), "ragged batch mismatch"

    # List input mirrors the module's `isinstance(inputs, list)` branch.
    out_list = jax.block_until_ready(
        semantic_map_forward([x], w1_conv, w2_conv, compute_dtype=jnp.float32))
    assert jnp.allclose(out_list, ref, atol=1e-4, rtol=1e-4), "list-input mismatch"

    print("KERNEL_OK")
</pallas_src>

<mosaic_0001>
module attributes {stable_mosaic.version = 11 : i64} {
  func.func @_semantic_map_kernel(%arg0: i32, %arg1: i32, %arg2: memref<2x128x256xf32, #tpu.memory_space<vmem>>, %arg3: memref<32x128xf32, #tpu.memory_space<vmem>>, %arg4: memref<128x32xf32, #tpu.memory_space<vmem>>, %arg5: memref<2x128x256xf32, #tpu.memory_space<vmem>>) attributes {dimension_semantics = [#tpu.dimension_semantics<parallel>, #tpu.dimension_semantics<parallel>], iteration_bounds = array<i64: 1, 1>, scalar_prefetch = 0 : i64, scratch_operands = 0 : i64, tpu.core_type = #tpu.core_type<tc>, window_params = [{transform_indices = @transform_0, window_bounds = array<i64: 2, 128, 256>}, {pipeline_mode = #tpu.pipeline_mode<synchronous>, transform_indices = @transform_1, window_bounds = array<i64: 32, 128>}, {pipeline_mode = #tpu.pipeline_mode<synchronous>, transform_indices = @transform_2, window_bounds = array<i64: 128, 32>}, {transform_indices = @transform_3, window_bounds = array<i64: 2, 128, 256>}]} {
    %c0 = arith.constant 0 : index
    %c0_0 = arith.constant 0 : index
    %0 = vector.load %arg3[%c0, %c0_0] : memref<32x128xf32, #tpu.memory_space<vmem>>, vector<32x128xf32>
    %c0_1 = arith.constant 0 : index
    %c0_2 = arith.constant 0 : index
    %1 = vector.load %arg4[%c0_1, %c0_2] : memref<128x32xf32, #tpu.memory_space<vmem>>, vector<128x32xf32>
    %c0_3 = arith.constant 0 : index
    %c0_4 = arith.constant 0 : index
    %c0_5 = arith.constant 0 : index
    %2 = vector.load %arg2[%c0_3, %c0_4, %c0_5] : memref<2x128x256xf32, #tpu.memory_space<vmem>>, vector<1x128x256xf32>
    %3 = vector.shape_cast %2 : vector<1x128x256xf32> to vector<128x256xf32>
    %cst = arith.constant dense<0.000000e+00> : vector<32x256xf32>
    %4 = tpu.matmul %0, %3, %cst {dimension_numbers = #tpu.dot_dimension_numbers<[1], [0], [0], [1], [0, 0, 1, 1], [], []>} : vector<32x128xf32>, vector<128x256xf32>, vector<32x256xf32> -> vector<32x256xf32>
    %cst_6 = arith.constant 0.000000e+00 : f32
    %5 = vector.broadcast %cst_6 : f32 to vector<32x256xf32>
    %6 = arith.maximumf %4, %5 : vector<32x256xf32>
    %cst_7 = arith.constant dense<0.000000e+00> : vector<128x256xf32>
    %7 = tpu.matmul %1, %6, %cst_7 {dimension_numbers = #tpu.dot_dimension_numbers<[1], [0], [0], [1], [0, 0, 1, 1], [], []>} : vector<128x32xf32>, vector<32x256xf32>, vector<128x256xf32> -> vector<128x256xf32>
    %c0_8 = arith.constant 0 : index
    %c0_9 = arith.constant 0 : index
    %c0_10 = arith.constant 0 : index
    %8 = vector.load %arg5[%c0_8, %c0_9, %c0_10] : memref<2x128x256xf32, #tpu.memory_space<vmem>>, vector<1x128x256xf32>
    %9 = vector.shape_cast %8 : vector<1x128x256xf32> to vector<128x256xf32>
    %10 = vector.shape_cast %7 : vector<128x256xf32> to vector<1x128x256xf32>
    tpu.vector_store %arg5[%c0_8, %c0_9, %c0_10], %10 {strides = array<i32>} : memref<2x128x256xf32, #tpu.memory_space<vmem>>, vector<1x128x256xf32>,
    %c1 = arith.constant 1 : index
    %c0_11 = arith.constant 0 : index
    %c0_12 = arith.constant 0 : index
    %11 = vector.load %arg2[%c1, %c0_11, %c0_12] : memref<2x128x256xf32, #tpu.memory_space<vmem>>, vector<1x128x256xf32>
    %12 = vector.shape_cast %11 : vector<1x128x256xf32> to vector<128x256xf32>
    %cst_13 = arith.constant dense<0.000000e+00> : vector<32x256xf32>
    %13 = tpu.matmul %0, %12, %cst_13 {dimension_numbers = #tpu.dot_dimension_numbers<[1], [0], [0], [1], [0, 0, 1, 1], [], []>} : vector<32x128xf32>, vector<128x256xf32>, vector<32x256xf32> -> vector<32x256xf32>
    %cst_14 = arith.constant 0.000000e+00 : f32
    %14 = vector.broadcast %cst_14 : f32 to vector<32x256xf32>
    %15 = arith.maximumf %13, %14 : vector<32x256xf32>
    %cst_15 = arith.constant dense<0.000000e+00> : vector<128x256xf32>
    %16 = tpu.matmul %1, %15, %cst_15 {dimension_numbers = #tpu.dot_dimension_numbers<[1], [0], [0], [1], [0, 0, 1, 1], [], []>} : vector<128x32xf32>, vector<32x256xf32>, vector<128x256xf32> -> vector<128x256xf32>
    %c1_16 = arith.constant 1 : index
    %c0_17 = arith.constant 0 : index
    %c0_18 = arith.constant 0 : index
    %17 = vector.load %arg5[%c1_16, %c0_17, %c0_18] : memref<2x128x256xf32, #tpu.memory_space<vmem>>, vector<1x128x256xf32>
    %18 = vector.shape_cast %17 : vector<1x128x256xf32> to vector<128x256xf32>
    %19 = vector.shape_cast %16 : vector<128x256xf32> to vector<1x128x256xf32>
    tpu.vector_store %arg5[%c1_16, %c0_17, %c0_18], %19 {strides = array<i32>} : memref<2x128x256xf32, #tpu.memory_space<vmem>>, vector<1x128x256xf32>,
    return
  }
  func.func @transform_0(%arg0: i32, %arg1: i32) -> (i32, i32, i32) {
    %c0_i32 = arith.constant 0 : i32
    %c0_i32_0 = arith.constant 0 : i32
    return %arg1, %c0_i32, %arg0 : i32, i32, i32
  }
  func.func @transform_1(%arg0: i32, %arg1: i32) -> (i32, i32) {
    %c0_i32 = arith.constant 0 : i32
    %c0_i32_0 = arith.constant 0 : i32
    %c0_i32_1 = arith.constant 0 : i32
    return %c0_i32, %c0_i32_0 : i32, i32
  }
  func.func @transform_2(%arg0: i32, %arg1: i32) -> (i32, i32) {
    %c0_i32 = arith.constant 0 : i32
    %c0_i32_0 = arith.constant 0 : i32
    %c0_i32_1 = arith.constant 0 : i32
    return %c0_i32, %c0_i32_0 : i32, i32
  }
  func.func @transform_3(%arg0: i32, %arg1: i32) -> (i32, i32, i32) {
    %c0_i32 = arith.constant 0 : i32
    %c0_i32_0 = arith.constant 0 : i32
    return %arg1, %c0_i32, %arg0 : i32, i32, i32
  }
}

</mosaic_0001>

<bundles_post_ra>
// kernel: semantic_map_forward.1
= control target key start
LH: loop header
LB: loop body
LE: loop exit
PB: predicated region body
PF: predicated region fallthrough
CT: control target
= control target key end

     0   :  { %vm132_vm0 = vcmask 261120   ;;  %s1279_s0 = inlined_call_operand.vmem [shape: f32[2,128,256], index: 0, kind: input, shape index: {}]   ;;  %s1280_s1 = inlined_call_operand.vmem [shape: f32[32,128], index: 1, kind: input, shape index: {}]   ;;  %s1281_s2 = inlined_call_operand.vmem [shape: f32[128,32], index: 2, kind: input, shape index: {}]   ;;  %s1282_s3 = inlined_call_operand.vmem [shape: f32[2,128,256], index: 3, kind: output, shape index: {}]  }
   0x1   :  { %v64_v0 = vld [vmem:[%s1279_s0 + $0xf0] sm:$0xff]  ;;  %v65_v1 = vld [vmem:[%s1279_s0 + $0xf8] sm:$0xff]  ;;  %v62_v2 = vld [vmem:[%s1279_s0 + $0xe0] sm:$0xff] }
   0x2   :  { %66 = vmatpush.msra.mxu0 %v64_v0  ;;  %95 = vmatpush.msra.mxu1 %v65_v1  ;;  %v63_v3 = vld [vmem:[%s1279_s0 + $0xe8] sm:$0xff]  ;;  %v60_v4 = vld [vmem:[%s1279_s0 + $0xd0] sm:$0xff]  ;;  %v61_v5 = vld [vmem:[%s1279_s0 + $0xd8] sm:$0xff] }
   0x3   :  { %v58_v6 = vld [vmem:[%s1279_s0 + $0xc0] sm:$0xff]  ;;  %v59_v7 = vld [vmem:[%s1279_s0 + $0xc8] sm:$0xff]  ;;  %v56_v8 = vld [vmem:[%s1279_s0 + $0xb0] sm:$0xff] }
   0x4   :  { %67 = vmatpush.msra.mxu0 %v62_v2  ;;  %96 = vmatpush.msra.mxu1 %v63_v3  ;;  %v57_v9 = vld [vmem:[%s1279_s0 + $0xb8] sm:$0xff]  ;;  %v54_v10 = vld [vmem:[%s1279_s0 + $0xa0] sm:$0xff]  ;;  %v55_v11 = vld [vmem:[%s1279_s0 + $0xa8] sm:$0xff] }
   0x5   :  { %v52_v12 = vld [vmem:[%s1279_s0 + $0x90] sm:$0xff]  ;;  %v53_v13 = vld [vmem:[%s1279_s0 + $0x98] sm:$0xff]  ;;  %v50_v14 = vld [vmem:[%s1279_s0 + $0x80] sm:$0xff] }
   0x6   :  { %68 = vmatpush.msra.mxu0 %v60_v4  ;;  %97 = vmatpush.msra.mxu1 %v61_v5  ;;  %v51_v15 = vld [vmem:[%s1279_s0 + $0x88] sm:$0xff]  ;;  %v48_v16 = vld [vmem:[%s1279_s0 + $0x70] sm:$0xff]  ;;  %v49_v17 = vld [vmem:[%s1279_s0 + $0x78] sm:$0xff] }
   0x7   :  { %v46_v18 = vld [vmem:[%s1279_s0 + $0x60] sm:$0xff]  ;;  %v47_v19 = vld [vmem:[%s1279_s0 + $0x68] sm:$0xff]  ;;  %v44_v20 = vld [vmem:[%s1279_s0 + $0x50] sm:$0xff] }
   0x8   :  { %69 = vmatpush.msra.mxu0 %v58_v6  ;;  %98 = vmatpush.msra.mxu1 %v59_v7  ;;  %v45_v21 = vld [vmem:[%s1279_s0 + $0x58] sm:$0xff]  ;;  %v42_v22 = vld [vmem:[%s1279_s0 + $0x40] sm:$0xff]  ;;  %v43_v23 = vld [vmem:[%s1279_s0 + $0x48] sm:$0xff] }
   0x9   :  { %v40_v24 = vld [vmem:[%s1279_s0 + $0x30] sm:$0xff]  ;;  %v41_v25 = vld [vmem:[%s1279_s0 + $0x38] sm:$0xff]  ;;  %v38_v26 = vld [vmem:[%s1279_s0 + $0x20] sm:$0xff] }
   0xa   :  { %70 = vmatpush.msra.mxu0 %v56_v8  ;;  %99 = vmatpush.msra.mxu1 %v57_v9  ;;  %v39_v27 = vld [vmem:[%s1279_s0 + $0x28] sm:$0xff]  ;;  %v36_v28 = vld [vmem:[%s1279_s0 + $0x10] sm:$0xff]  ;;  %v37_v29 = vld [vmem:[%s1279_s0 + $0x18] sm:$0xff] }
   0xb   :  { %v34_v30 = vld [vmem:[%s1279_s0] sm:$0xff]  ;;  %v35_v31 = vld [vmem:[%s1279_s0 + $0x8] sm:$0xff]  ;;  %v671_v33 = vld [vmem:[%s1279_s0 + $0x1f0] sm:$0xff] }
   0xc   :  { %71 = vmatpush.msra.mxu0 %v54_v10  ;;  %100 = vmatpush.msra.mxu1 %v55_v11  ;;  %v864_v32 = vld [vmem:[%s1280_s1] sm:$0xff]  ;;  %v672_v34 = vld [vmem:[%s1279_s0 + $0x1f8] sm:$0xff]  ;;  %v670_v36 = vld [vmem:[%s1279_s0 + $0x1e8] sm:$0xff] }
   0xd   :  { %v669_v35 = vld [vmem:[%s1279_s0 + $0x1e0] sm:$0xff]  ;;  %v667_v37 = vld [vmem:[%s1279_s0 + $0x1d0] sm:$0xff]  ;;  %v668_v38 = vld [vmem:[%s1279_s0 + $0x1d8] sm:$0xff] }
   0xe   :  { %72 = vmatpush.msra.mxu0 %v52_v12  ;;  %101 = vmatpush.msra.mxu1 %v53_v13  ;;  %v665_v39 = vld [vmem:[%s1279_s0 + $0x1c0] sm:$0xff]  ;;  %v666_v40 = vld [vmem:[%s1279_s0 + $0x1c8] sm:$0xff]  ;;  %v663_v42 = vld [vmem:[%s1279_s0 + $0x1b0] sm:$0xff] }
   0xf   :  { %v15_v41 = vld [vmem:[%s1280_s1 + $0x8] sm:$0xff]  ;;  %v664_v43 = vld [vmem:[%s1279_s0 + $0x1b8] sm:$0xff]  ;;  %v661_v44 = vld [vmem:[%s1279_s0 + $0x1a0] sm:$0xff] }
  0x10   :  { %73 = vmatpush.msra.mxu0 %v50_v14  ;;  %102 = vmatpush.msra.mxu1 %v51_v15  ;;  %v662_v45 = vld [vmem:[%s1279_s0 + $0x1a8] sm:$0xff]  ;;  %v659_v46 = vld [vmem:[%s1279_s0 + $0x190] sm:$0xff]  ;;  %v660_v47 = vld [vmem:[%s1279_s0 + $0x198] sm:$0xff] }
  0x11   :  { %v657_v48 = vld [vmem:[%s1279_s0 + $0x180] sm:$0xff]  ;;  %v658_v49 = vld [vmem:[%s1279_s0 + $0x188] sm:$0xff]  ;;  %v16_v50 = vld [vmem:[%s1280_s1 + $0x10] sm:$0xff] }
  0x12   :  { %74 = vmatpush.msra.mxu0 %v48_v16  ;;  %103 = vmatpush.msra.mxu1 %v49_v17  ;;  %v655_v51 = vld [vmem:[%s1279_s0 + $0x170] sm:$0xff]  ;;  %v656_v52 = vld [vmem:[%s1279_s0 + $0x178] sm:$0xff]  ;;  %v653_v53 = vld [vmem:[%s1279_s0 + $0x160] sm:$0xff] }
  0x13   :  { %v654_v54 = vld [vmem:[%s1279_s0 + $0x168] sm:$0xff]  ;;  %v651_v55 = vld [vmem:[%s1279_s0 + $0x150] sm:$0xff]  ;;  %v652_v56 = vld [vmem:[%s1279_s0 + $0x158] sm:$0xff] }
  0x14   :  { %75 = vmatpush.msra.mxu0 %v46_v18  ;;  %104 = vmatpush.msra.mxu1 %v47_v19  ;;  %v649_v57 = vld [vmem:[%s1279_s0 + $0x140] sm:$0xff]  ;;  %v650_v58 = vld [vmem:[%s1279_s0 + $0x148] sm:$0xff]  ;;  %v17_v59 = vld [vmem:[%s1280_s1 + $0x18] sm:$0xff] }
  0x15   :  { %v647_v60 = vld [vmem:[%s1279_s0 + $0x130] sm:$0xff]  ;;  %v648_v61 = vld [vmem:[%s1279_s0 + $0x138] sm:$0xff]  ;;  %v645_v62 = vld [vmem:[%s1279_s0 + $0x120] sm:$0xff] }
  0x16   :  { %76 = vmatpush.msra.mxu0 %v44_v20  ;;  %105 = vmatpush.msra.mxu1 %v45_v21  ;;  %v646_v63 = vld [vmem:[%s1279_s0 + $0x128] sm:$0xff]  ;;  %v643_v0 = vld [vmem:[%s1279_s0 + $0x110] sm:$0xff]  ;;  %v644_v1 = vld [vmem:[%s1279_s0 + $0x118] sm:$0xff] }
  0x17   :  { %v641_v2 = vld [vmem:[%s1279_s0 + $0x100] sm:$0xff]  ;;  %v642_v3 = vld [vmem:[%s1279_s0 + $0x108] sm:$0xff] }
  0x18   :  { %77 = vmatpush.msra.mxu0 %v42_v22  ;;  %106 = vmatpush.msra.mxu1 %v43_v23  ;;  %v18_v20 = vld [vmem:[%s1281_s2] sm:$0xff]  ;;  %v19_v23 = vld [vmem:[%s1281_s2 + $0x8] sm:$0xff] }
  0x1a   :  { %78 = vmatpush.msra.mxu0 %v40_v24  ;;  %107 = vmatpush.msra.mxu1 %v41_v25 }
  0x1c   :  { %79 = vmatpush.msra.mxu0 %v38_v26  ;;  %108 = vmatpush.msra.mxu1 %v39_v27  ;;  %v20_v26 = vld [vmem:[%s1281_s2 + $0x10] sm:$0xff] }
  0x1e   :  { %80 = vmatpush.msra.mxu0 %v36_v28  ;;  %109 = vmatpush.msra.mxu1 %v37_v29  ;;  %v21_v29 = vld [vmem:[%s1281_s2 + $0x18] sm:$0xff] }
  0x20   :  { %81 = vmatpush.msra.mxu0 %v34_v30  ;;  %110 = vmatpush.msra.mxu1 %v35_v31 }
  0x21   :  { %82 = vmatmul.f32.vlgmr.msra.gmra.mxu0 %v864_v32  ;;  %111 = vmatmul.f32.vlgmr.msra.gmra.mxu1 %v864_v32 }
  0x22   :  { %376 = vmatpush.msrb.mxu0 %v671_v33  ;;  %405 = vmatpush.msrb.mxu1 %v672_v34 }
  0x24   :  { %377 = vmatpush.msrb.mxu0 %v669_v35  ;;  %406 = vmatpush.msrb.mxu1 %v670_v36 }
  0x26   :  { %378 = vmatpush.msrb.mxu0 %v667_v37  ;;  %407 = vmatpush.msrb.mxu1 %v668_v38 }
  0x28   :  { %379 = vmatpush.msrb.mxu0 %v665_v39  ;;  %408 = vmatpush.msrb.mxu1 %v666_v40  ;;  %v22_v40 = vld [vmem:[%s1281_s2 + $0x20] sm:$0xff] }
  0x29   :  { %85 = vmatmul.f32.gmra.mxu0 %v15_v41  ;;  %114 = vmatmul.f32.gmra.mxu1 %v15_v41 }
  0x2a   :  { %380 = vmatpush.msrb.mxu0 %v663_v42  ;;  %409 = vmatpush.msrb.mxu1 %v664_v43  ;;  %v24_v42 = vld [vmem:[%s1281_s2 + $0x30] sm:$0xff]  ;;  %v25_v43 = vld [vmem:[%s1281_s2 + $0x38] sm:$0xff] }
  0x2c   :  { %381 = vmatpush.msrb.mxu0 %v661_v44  ;;  %410 = vmatpush.msrb.mxu1 %v662_v45  ;;  %v26_v44 = vld [vmem:[%s1281_s2 + $0x40] sm:$0xff]  ;;  %v27_v45 = vld [vmem:[%s1281_s2 + $0x48] sm:$0xff] }
  0x2e   :  { %382 = vmatpush.msrb.mxu0 %v659_v46  ;;  %411 = vmatpush.msrb.mxu1 %v660_v47  ;;  %v28_v46 = vld [vmem:[%s1281_s2 + $0x50] sm:$0xff]  ;;  %v29_v47 = vld [vmem:[%s1281_s2 + $0x58] sm:$0xff] }
  0x30   :  { %383 = vmatpush.msrb.mxu0 %v657_v48  ;;  %412 = vmatpush.msrb.mxu1 %v658_v49  ;;  %v30_v48 = vld [vmem:[%s1281_s2 + $0x60] sm:$0xff]  ;;  %v31_v49 = vld [vmem:[%s1281_s2 + $0x68] sm:$0xff] }
  0x31   :  { %88 = vmatmul.f32.gmra.mxu0 %v16_v50  ;;  %117 = vmatmul.f32.gmra.mxu1 %v16_v50 }
  0x32   :  { %384 = vmatpush.msrb.mxu0 %v655_v51  ;;  %413 = vmatpush.msrb.mxu1 %v656_v52  ;;  %v33_v51 = vld [vmem:[%s1281_s2 + $0x78] sm:$0xff] }
  0x34   :  { %385 = vmatpush.msrb.mxu0 %v653_v53  ;;  %414 = vmatpush.msrb.mxu1 %v654_v54 }
  0x36   :  { %386 = vmatpush.msrb.mxu0 %v651_v55  ;;  %415 = vmatpush.msrb.mxu1 %v652_v56 }
  0x38   :  { %387 = vmatpush.msrb.mxu0 %v649_v57  ;;  %416 = vmatpush.msrb.mxu1 %v650_v58 }
  0x39   :  { %91 = vmatmul.f32.gmra.mxu0 %v17_v59  ;;  %120 = vmatmul.f32.gmra.mxu1 %v17_v59 }
  0x3a   :  { %388 = vmatpush.msrb.mxu0 %v647_v60  ;;  %417 = vmatpush.msrb.mxu1 %v648_v61 }
  0x3c   :  { %389 = vmatpush.msrb.mxu0 %v645_v62  ;;  %418 = vmatpush.msrb.mxu1 %v646_v63 }
  0x3e   :  { %390 = vmatpush.msrb.mxu0 %v643_v0  ;;  %419 = vmatpush.msrb.mxu1 %v644_v1 }
  0x40   :  { %391 = vmatpush.msrb.mxu0 %v641_v2  ;;  %420 = vmatpush.msrb.mxu1 %v642_v3 }
  0x41   :  { %392 = vmatmul.f32.vlgmr.msrb.gmra.mxu0 %v864_v32  ;;  %421 = vmatmul.f32.vlgmr.msrb.gmra.mxu1 %v864_v32 }
  0x49   :  { %395 = vmatmul.f32.gmra.mxu0 %v15_v41  ;;  %424 = vmatmul.f32.gmra.mxu1 %v15_v41  ;;  %v23_v41 = vld [vmem:[%s1281_s2 + $0x28] sm:$0xff] }
  0x51   :  { %398 = vmatmul.f32.gmra.mxu0 %v16_v50  ;;  %427 = vmatmul.f32.gmra.mxu1 %v16_v50  ;;  %v32_v50 = vld [vmem:[%s1281_s2 + $0x70] sm:$0xff] }
  0x59   :  { %401 = vmatmul.f32.gmra.mxu0 %v17_v59  ;;  %430 = vmatmul.f32.gmra.mxu1 %v17_v59 }
  0x9e   :  { %v83_v4 = vpop.f32.mrf.mxu0  ;;  %v112_v5 = vpop.f32.mrf.mxu1 }
  0x9f   :  { %v124_v18 = vmax.f32 %v83_v4, 0.0  ;;  %v125_v19 = vmax.f32 %v112_v5, 0.0 }
  0xa6   :  { %v86_v6 = vpop.f32.mrf.mxu0  ;;  %v115_v7 = vpop.f32.mrf.mxu1 }
  0xa7   :  { %v126_v16 = vmax.f32 %v86_v6, 0.0  ;;  %v127_v17 = vmax.f32 %v115_v7, 0.0 }
  0xae   :  { %v89_v8 = vpop.f32.mrf.mxu0  ;;  %v118_v9 = vpop.f32.mrf.mxu1 }
  0xaf   :  { %v128_v14 = vmax.f32 %v89_v8, 0.0  ;;  %v129_v15 = vmax.f32 %v118_v9, 0.0 }
  0xb6   :  { %v92_v10 = vpop.f32.mrf.mxu0  ;;  %v121_v11 = vpop.f32.mrf.mxu1 }
  0xb7   :  { %v130_v12 = vmax.f32 %v92_v10, 0.0  ;;  %v131_v13 = vmax.f32 %v121_v11, 0.0 }
  0xb9   :  { %193 = vmatpush.msra.mxu2 %v130_v12  ;;  %258 = vmatpush.msra.mxu3 %v131_v13 }
  0xbb   :  { %194 = vmatpush.msra.mxu2 %v128_v14  ;;  %259 = vmatpush.msra.mxu3 %v129_v15 }
  0xbd   :  { %195 = vmatpush.msra.mxu2 %v126_v16  ;;  %260 = vmatpush.msra.mxu3 %v127_v17 }
  0xbe   :  { %v393_v21 = vpop.f32.mrf.mxu0  ;;  %v422_v22 = vpop.f32.mrf.mxu1 }
  0xbf   :  { %196 = vmatpush.msra.mxu2 %v124_v18  ;;  %261 = vmatpush.msra.mxu3 %v125_v19  ;;  %v434_v38 = vmax.f32 %v393_v21, 0.0  ;;  %v435_v39 = vmax.f32 %v422_v22, 0.0 }
  0xc0   :  { %609 = vmatmul.msk.f32.vlgmr.msra.gmra.mxu2 %vm132_vm0, %v18_v20  ;;  %625 = vmatmul.msk.f32.vlgmr.msra.gmra.mxu3 %vm132_vm0, %v18_v20 }
  0xc6   :  { %v396_v24 = vpop.f32.mrf.mxu0  ;;  %v425_v25 = vpop.f32.mrf.mxu1 }
  0xc7   :  { %v436_v36 = vmax.f32 %v396_v24, 0.0  ;;  %v437_v37 = vmax.f32 %v425_v25, 0.0 }
  0xc8   :  { %610 = vmatmul.msk.f32.gmra.mxu2 %vm132_vm0, %v19_v23  ;;  %626 = vmatmul.msk.f32.gmra.mxu3 %vm132_vm0, %v19_v23 }
  0xce   :  { %v399_v27 = vpop.f32.mrf.mxu0  ;;  %v428_v28 = vpop.f32.mrf.mxu1 }
  0xcf   :  { %v438_v32 = vmax.f32 %v399_v27, 0.0  ;;  %v439_v35 = vmax.f32 %v428_v28, 0.0 }
  0xd0   :  { %611 = vmatmul.msk.f32.gmra.mxu2 %vm132_vm0, %v20_v26  ;;  %627 = vmatmul.msk.f32.gmra.mxu3 %vm132_vm0, %v20_v26 }
  0xd6   :  { %v402_v30 = vpop.f32.mrf.mxu0  ;;  %v431_v31 = vpop.f32.mrf.mxu1 }
  0xd7   :  { %v440_v33 = vmax.f32 %v402_v30, 0.0  ;;  %v441_v34 = vmax.f32 %v431_v31, 0.0 }
  0xd8   :  { %612 = vmatmul.msk.f32.gmra.mxu2 %vm132_vm0, %v21_v29  ;;  %628 = vmatmul.msk.f32.gmra.mxu3 %vm132_vm0, %v21_v29 }
  0xd9   :  { %454 = vmatpush.msra.mxu0 %v440_v33  ;;  %737 = vmatpush.msrb.mxu2 %v440_v33 }
  0xda   :  { %519 = vmatpush.msra.mxu1 %v441_v34  ;;  %741 = vmatpush.msrb.mxu3 %v441_v34 }
  0xdb   :  { %455 = vmatpush.msra.mxu0 %v438_v32  ;;  %738 = vmatpush.msrb.mxu2 %v438_v32 }
  0xdc   :  { %520 = vmatpush.msra.mxu1 %v439_v35  ;;  %742 = vmatpush.msrb.mxu3 %v439_v35 }
  0xdd   :  { %456 = vmatpush.msra.mxu0 %v436_v36  ;;  %739 = vmatpush.msrb.mxu2 %v436_v36 }
  0xde   :  { %521 = vmatpush.msra.mxu1 %v437_v37  ;;  %743 = vmatpush.msrb.mxu3 %v437_v37 }
  0xdf   :  { %457 = vmatpush.msra.mxu0 %v434_v38  ;;  %740 = vmatpush.msrb.mxu2 %v434_v38 }
  0xe0   :  { %522 = vmatpush.msra.mxu1 %v435_v39  ;;  %744 = vmatpush.msrb.mxu3 %v435_v39 }
  0xe1   :  { %613 = vmatmul.msk.f32.gmra.mxu2 %vm132_vm0, %v22_v40  ;;  %629 = vmatmul.msk.f32.gmra.mxu3 %vm132_vm0, %v22_v40 }
  0xe2   :  { %673 = vmatmul.msk.f32.vlgmr.msra.gmra.mxu0 %vm132_vm0, %v18_v20  ;;  %689 = vmatmul.msk.f32.vlgmr.msra.gmra.mxu1 %vm132_vm0, %v18_v20 }
  0xe9   :  { %614 = vmatmul.msk.f32.gmra.mxu2 %vm132_vm0, %v23_v41  ;;  %630 = vmatmul.msk.f32.gmra.mxu3 %vm132_vm0, %v23_v41 }
  0xea   :  { %674 = vmatmul.msk.f32.gmra.mxu0 %vm132_vm0, %v19_v23  ;;  %690 = vmatmul.msk.f32.gmra.mxu1 %vm132_vm0, %v19_v23 }
  0xf1   :  { %615 = vmatmul.msk.f32.gmra.mxu2 %vm132_vm0, %v24_v42  ;;  %631 = vmatmul.msk.f32.gmra.mxu3 %vm132_vm0, %v24_v42 }
  0xf2   :  { %675 = vmatmul.msk.f32.gmra.mxu0 %vm132_vm0, %v20_v26  ;;  %691 = vmatmul.msk.f32.gmra.mxu1 %vm132_vm0, %v20_v26 }
  0xf9   :  { %616 = vmatmul.msk.f32.gmra.mxu2 %vm132_vm0, %v25_v43  ;;  %632 = vmatmul.msk.f32.gmra.mxu3 %vm132_vm0, %v25_v43 }
  0xfa   :  { %676 = vmatmul.msk.f32.gmra.mxu0 %vm132_vm0, %v21_v29  ;;  %692 = vmatmul.msk.f32.gmra.mxu1 %vm132_vm0, %v21_v29 }
 0x101   :  { %617 = vmatmul.msk.f32.gmra.mxu2 %vm132_vm0, %v26_v44  ;;  %633 = vmatmul.msk.f32.gmra.mxu3 %vm132_vm0, %v26_v44 }
 0x102   :  { %677 = vmatmul.msk.f32.gmra.mxu0 %vm132_vm0, %v22_v40  ;;  %693 = vmatmul.msk.f32.gmra.mxu1 %vm132_vm0, %v22_v40 }
 0x109   :  { %618 = vmatmul.msk.f32.gmra.mxu2 %vm132_vm0, %v27_v45  ;;  %634 = vmatmul.msk.f32.gmra.mxu3 %vm132_vm0, %v27_v45 }
 0x10a   :  { %678 = vmatmul.msk.f32.gmra.mxu0 %vm132_vm0, %v23_v41  ;;  %694 = vmatmul.msk.f32.gmra.mxu1 %vm132_vm0, %v23_v41 }
 0x111   :  { %619 = vmatmul.msk.f32.gmra.mxu2 %vm132_vm0, %v28_v46  ;;  %635 = vmatmul.msk.f32.gmra.mxu3 %vm132_vm0, %v28_v46 }
 0x112   :  { %679 = vmatmul.msk.f32.gmra.mxu0 %vm132_vm0, %v24_v42  ;;  %695 = vmatmul.msk.f32.gmra.mxu1 %vm132_vm0, %v24_v42 }
 0x119   :  { %620 = vmatmul.msk.f32.gmra.mxu2 %vm132_vm0, %v29_v47  ;;  %636 = vmatmul.msk.f32.gmra.mxu3 %vm132_vm0, %v29_v47 }
 0x11a   :  { %680 = vmatmul.msk.f32.gmra.mxu0 %vm132_vm0, %v25_v43  ;;  %696 = vmatmul.msk.f32.gmra.mxu1 %vm132_vm0, %v25_v43 }
 0x121   :  { %621 = vmatmul.msk.f32.gmra.mxu2 %vm132_vm0, %v30_v48  ;;  %637 = vmatmul.msk.f32.gmra.mxu3 %vm132_vm0, %v30_v48 }
 0x122   :  { %681 = vmatmul.msk.f32.gmra.mxu0 %vm132_vm0, %v26_v44  ;;  %697 = vmatmul.msk.f32.gmra.mxu1 %vm132_vm0, %v26_v44 }
 0x129   :  { %622 = vmatmul.msk.f32.gmra.mxu2 %vm132_vm0, %v31_v49  ;;  %638 = vmatmul.msk.f32.gmra.mxu3 %vm132_vm0, %v31_v49 }
 0x12a   :  { %682 = vmatmul.msk.f32.gmra.mxu0 %vm132_vm0, %v27_v45  ;;  %698 = vmatmul.msk.f32.gmra.mxu1 %vm132_vm0, %v27_v45 }
 0x131   :  { %623 = vmatmul.msk.f32.gmra.mxu2 %vm132_vm0, %v32_v50  ;;  %639 = vmatmul.msk.f32.gmra.mxu3 %vm132_vm0, %v32_v50 }
 0x132   :  { %683 = vmatmul.msk.f32.gmra.mxu0 %vm132_vm0, %v28_v46  ;;  %699 = vmatmul.msk.f32.gmra.mxu1 %vm132_vm0, %v28_v46 }
 0x139   :  { %624 = vmatmul.msk.f32.gmra.mxu2 %vm132_vm0, %v33_v51  ;;  %640 = vmatmul.msk.f32.gmra.mxu3 %vm132_vm0, %v33_v51 }
 0x141   :  { %684 = vmatmul.msk.f32.vlgmr.msrb.gmra.mxu2 %vm132_vm0, %v29_v47  ;;  %700 = vmatmul.msk.f32.vlgmr.msrb.gmra.mxu3 %vm132_vm0, %v29_v47 }
 0x143   :  { %v198_v52 = vpop.f32.mrf.mxu2  ;;  %v263_v53 = vpop.f32.mrf.mxu3 }
 0x144   :  { %311 = vst [vmem:[%s1282_s3] sm:$0xff] %v198_v52 }
 0x145   :  { %312 = vst [vmem:[%s1282_s3 + $0x8] sm:$0xff] %v263_v53 }
 0x149   :  { %685 = vmatmul.msk.f32.gmra.mxu2 %vm132_vm0, %v30_v48  ;;  %701 = vmatmul.msk.f32.gmra.mxu3 %vm132_vm0, %v30_v48 }
 0x14b   :  { %v201_v54 = vpop.f32.mrf.mxu2  ;;  %v266_v55 = vpop.f32.mrf.mxu3 }
 0x14c   :  { %313 = vst [vmem:[%s1282_s3 + $0x10] sm:$0xff] %v201_v54 }
 0x14d   :  { %314 = vst [vmem:[%s1282_s3 + $0x18] sm:$0xff] %v266_v55 }
 0x151   :  { %686 = vmatmul.msk.f32.gmra.mxu2 %vm132_vm0, %v31_v49  ;;  %702 = vmatmul.msk.f32.gmra.mxu3 %vm132_vm0, %v31_v49 }
 0x153   :  { %v204_v56 = vpop.f32.mrf.mxu2  ;;  %v269_v57 = vpop.f32.mrf.mxu3 }
 0x154   :  { %315 = vst [vmem:[%s1282_s3 + $0x20] sm:$0xff] %v204_v56 }
 0x155   :  { %316 = vst [vmem:[%s1282_s3 + $0x28] sm:$0xff] %v269_v57 }
 0x159   :  { %687 = vmatmul.msk.f32.gmra.mxu2 %vm132_vm0, %v32_v50  ;;  %703 = vmatmul.msk.f32.gmra.mxu3 %vm132_vm0, %v32_v50 }
 0x15b   :  { %v207_v58 = vpop.f32.mrf.mxu2  ;;  %v272_v59 = vpop.f32.mrf.mxu3 }
 0x15c   :  { %317 = vst [vmem:[%s1282_s3 + $0x30] sm:$0xff] %v207_v58 }
 0x15d   :  { %318 = vst [vmem:[%s1282_s3 + $0x38] sm:$0xff] %v272_v59 }
 0x15f   :  { %v459_v2 = vpop.f32.mrf.mxu0  ;;  %v524_v3 = vpop.f32.mrf.mxu1 }
 0x160   :  { %705 = vst [vmem:[%s1282_s3 + $0x100] sm:$0xff] %v459_v2 }
 0x161   :  { %688 = vmatmul.msk.f32.gmra.mxu2 %vm132_vm0, %v33_v51  ;;  %704 = vmatmul.msk.f32.gmra.mxu3 %vm132_vm0, %v33_v51  ;;  %706 = vst [vmem:[%s1282_s3 + $0x108] sm:$0xff] %v524_v3 }
 0x164   :  { %v210_v60 = vpop.f32.mrf.mxu2  ;;  %v275_v61 = vpop.f32.mrf.mxu3 }
 0x165   :  { %319 = vst [vmem:[%s1282_s3 + $0x40] sm:$0xff] %v210_v60 }
 0x166   :  { %320 = vst [vmem:[%s1282_s3 + $0x48] sm:$0xff] %v275_v61 }
 0x167   :  { %v462_v6 = vpop.f32.mrf.mxu0  ;;  %v527_v7 = vpop.f32.mrf.mxu1 }
 0x168   :  { %707 = vst [vmem:[%s1282_s3 + $0x110] sm:$0xff] %v462_v6 }
 0x169   :  { %708 = vst [vmem:[%s1282_s3 + $0x118] sm:$0xff] %v527_v7 }
 0x16c   :  { %v213_v62 = vpop.f32.mrf.mxu2  ;;  %v278_v63 = vpop.f32.mrf.mxu3 }
 0x16d   :  { %321 = vst [vmem:[%s1282_s3 + $0x50] sm:$0xff] %v213_v62 }
 0x16e   :  { %322 = vst [vmem:[%s1282_s3 + $0x58] sm:$0xff] %v278_v63 }
 0x16f   :  { %v465_v10 = vpop.f32.mrf.mxu0  ;;  %v530_v11 = vpop.f32.mrf.mxu1 }
 0x170   :  { %709 = vst [vmem:[%s1282_s3 + $0x120] sm:$0xff] %v465_v10 }
 0x171   :  { %710 = vst [vmem:[%s1282_s3 + $0x128] sm:$0xff] %v530_v11 }
 0x174   :  { %v216_v0 = vpop.f32.mrf.mxu2  ;;  %v281_v1 = vpop.f32.mrf.mxu3 }
 0x175   :  { %323 = vst [vmem:[%s1282_s3 + $0x60] sm:$0xff] %v216_v0 }
 0x176   :  { %324 = vst [vmem:[%s1282_s3 + $0x68] sm:$0xff] %v281_v1 }
 0x177   :  { %v468_v14 = vpop.f32.mrf.mxu0  ;;  %v533_v15 = vpop.f32.mrf.mxu1 }
 0x178   :  { %711 = vst [vmem:[%s1282_s3 + $0x130] sm:$0xff] %v468_v14 }
 0x179   :  { %712 = vst [vmem:[%s1282_s3 + $0x138] sm:$0xff] %v533_v15 }
 0x17c   :  { %v219_v4 = vpop.f32.mrf.mxu2  ;;  %v284_v5 = vpop.f32.mrf.mxu3 }
 0x17d   :  { %325 = vst [vmem:[%s1282_s3 + $0x70] sm:$0xff] %v219_v4 }
 0x17e   :  { %326 = vst [vmem:[%s1282_s3 + $0x78] sm:$0xff] %v284_v5 }
 0x17f   :  { %v471_v18 = vpop.f32.mrf.mxu0  ;;  %v536_v19 = vpop.f32.mrf.mxu1 }
 0x180   :  { %713 = vst [vmem:[%s1282_s3 + $0x140] sm:$0xff] %v471_v18 }
 0x181   :  { %714 = vst [vmem:[%s1282_s3 + $0x148] sm:$0xff] %v536_v19 }
 0x184   :  { %v222_v8 = vpop.f32.mrf.mxu2  ;;  %v287_v9 = vpop.f32.mrf.mxu3 }
 0x185   :  { %327 = vst [vmem:[%s1282_s3 + $0x80] sm:$0xff] %v222_v8 }
 0x186   :  { %328 = vst [vmem:[%s1282_s3 + $0x88] sm:$0xff] %v287_v9 }
 0x187   :  { %v474_v22 = vpop.f32.mrf.mxu0  ;;  %v539_v23 = vpop.f32.mrf.mxu1 }
 0x188   :  { %715 = vst [vmem:[%s1282_s3 + $0x150] sm:$0xff] %v474_v22 }
 0x189   :  { %716 = vst [vmem:[%s1282_s3 + $0x158] sm:$0xff] %v539_v23 }
 0x18c   :  { %v225_v12 = vpop.f32.mrf.mxu2  ;;  %v290_v13 = vpop.f32.mrf.mxu3 }
 0x18d   :  { %329 = vst [vmem:[%s1282_s3 + $0x90] sm:$0xff] %v225_v12 }
 0x18e   :  { %330 = vst [vmem:[%s1282_s3 + $0x98] sm:$0xff] %v290_v13 }
 0x18f   :  { %v477_v26 = vpop.f32.mrf.mxu0  ;;  %v542_v27 = vpop.f32.mrf.mxu1 }
 0x190   :  { %717 = vst [vmem:[%s1282_s3 + $0x160] sm:$0xff] %v477_v26 }
 0x191   :  { %718 = vst [vmem:[%s1282_s3 + $0x168] sm:$0xff] %v542_v27 }
 0x194   :  { %v228_v16 = vpop.f32.mrf.mxu2  ;;  %v293_v17 = vpop.f32.mrf.mxu3 }
 0x195   :  { %331 = vst [vmem:[%s1282_s3 + $0xa0] sm:$0xff] %v228_v16 }
 0x196   :  { %332 = vst [vmem:[%s1282_s3 + $0xa8] sm:$0xff] %v293_v17 }
 0x197   :  { %v480_v30 = vpop.f32.mrf.mxu0  ;;  %v545_v31 = vpop.f32.mrf.mxu1 }
 0x198   :  { %719 = vst [vmem:[%s1282_s3 + $0x170] sm:$0xff] %v480_v30 }
 0x199   :  { %720 = vst [vmem:[%s1282_s3 + $0x178] sm:$0xff] %v545_v31 }
 0x19c   :  { %v231_v20 = vpop.f32.mrf.mxu2  ;;  %v296_v21 = vpop.f32.mrf.mxu3 }
 0x19d   :  { %333 = vst [vmem:[%s1282_s3 + $0xb0] sm:$0xff] %v231_v20 }
 0x19e   :  { %334 = vst [vmem:[%s1282_s3 + $0xb8] sm:$0xff] %v296_v21 }
 0x19f   :  { %v483_v34 = vpop.f32.mrf.mxu0  ;;  %v548_v35 = vpop.f32.mrf.mxu1 }
 0x1a0   :  { %721 = vst [vmem:[%s1282_s3 + $0x180] sm:$0xff] %v483_v34 }
 0x1a1   :  { %722 = vst [vmem:[%s1282_s3 + $0x188] sm:$0xff] %v548_v35 }
 0x1a4   :  { %v234_v24 = vpop.f32.mrf.mxu2  ;;  %v299_v25 = vpop.f32.mrf.mxu3 }
 0x1a5   :  { %335 = vst [vmem:[%s1282_s3 + $0xc0] sm:$0xff] %v234_v24 }
 0x1a6   :  { %336 = vst [vmem:[%s1282_s3 + $0xc8] sm:$0xff] %v299_v25 }
 0x1a7   :  { %v486_v38 = vpop.f32.mrf.mxu0  ;;  %v551_v39 = vpop.f32.mrf.mxu1 }
 0x1a8   :  { %723 = vst [vmem:[%s1282_s3 + $0x190] sm:$0xff] %v486_v38 }
 0x1a9   :  { %724 = vst [vmem:[%s1282_s3 + $0x198] sm:$0xff] %v551_v39 }
 0x1ac   :  { %v237_v28 = vpop.f32.mrf.mxu2  ;;  %v302_v29 = vpop.f32.mrf.mxu3 }
 0x1ad   :  { %337 = vst [vmem:[%s1282_s3 + $0xd0] sm:$0xff] %v237_v28 }
 0x1ae   :  { %338 = vst [vmem:[%s1282_s3 + $0xd8] sm:$0xff] %v302_v29 }
 0x1af   :  { %v489_v42 = vpop.f32.mrf.mxu0  ;;  %v554_v43 = vpop.f32.mrf.mxu1 }
 0x1b0   :  { %725 = vst [vmem:[%s1282_s3 + $0x1a0] sm:$0xff] %v489_v42 }
 0x1b1   :  { %726 = vst [vmem:[%s1282_s3 + $0x1a8] sm:$0xff] %v554_v43 }
 0x1b4   :  { %v240_v32 = vpop.f32.mrf.mxu2  ;;  %v305_v33 = vpop.f32.mrf.mxu3 }
 0x1b5   :  { %339 = vst [vmem:[%s1282_s3 + $0xe0] sm:$0xff] %v240_v32 }
 0x1b6   :  { %340 = vst [vmem:[%s1282_s3 + $0xe8] sm:$0xff] %v305_v33 }
 0x1bc   :  { %v243_v36 = vpop.f32.mrf.mxu2  ;;  %v308_v37 = vpop.f32.mrf.mxu3 }
 0x1bd   :  { %341 = vst [vmem:[%s1282_s3 + $0xf0] sm:$0xff] %v243_v36 }
 0x1be   :  { %342 = vst [vmem:[%s1282_s3 + $0xf8] sm:$0xff] %v308_v37 }
 0x1c4   :  { %v492_v40 = vpop.f32.mrf.mxu2  ;;  %v557_v41 = vpop.f32.mrf.mxu3 }
 0x1c5   :  { %727 = vst [vmem:[%s1282_s3 + $0x1b0] sm:$0xff] %v492_v40 }
 0x1c6   :  { %728 = vst [vmem:[%s1282_s3 + $0x1b8] sm:$0xff] %v557_v41 }
 0x1cc   :  { %v495_v44 = vpop.f32.mrf.mxu2  ;;  %v560_v45 = vpop.f32.mrf.mxu3 }
 0x1cd   :  { %729 = vst [vmem:[%s1282_s3 + $0x1c0] sm:$0xff] %v495_v44 }
 0x1ce   :  { %730 = vst [vmem:[%s1282_s3 + $0x1c8] sm:$0xff] %v560_v45 }
 0x1d4   :  { %v498_v46 = vpop.f32.mrf.mxu2  ;;  %v563_v47 = vpop.f32.mrf.mxu3 }
 0x1d5   :  { %731 = vst [vmem:[%s1282_s3 + $0x1d0] sm:$0xff] %v498_v46 }
 0x1d6   :  { %732 = vst [vmem:[%s1282_s3 + $0x1d8] sm:$0xff] %v563_v47 }
 0x1dc   :  { %v501_v48 = vpop.f32.mrf.mxu2  ;;  %v566_v49 = vpop.f32.mrf.mxu3 }
 0x1dd   :  { %733 = vst [vmem:[%s1282_s3 + $0x1e0] sm:$0xff] %v501_v48 }
 0x1de   :  { %734 = vst [vmem:[%s1282_s3 + $0x1e8] sm:$0xff] %v566_v49 }
 0x1e4   :  { %v504_v50 = vpop.f32.mrf.mxu2  ;;  %v569_v51 = vpop.f32.mrf.mxu3 }
 0x1e5   :  { %735 = vst [vmem:[%s1282_s3 + $0x1f0] sm:$0xff] %v504_v50 }
 0x1e6   :  { %736 = vst [vmem:[%s1282_s3 + $0x1f8] sm:$0xff] %v569_v51 }

</bundles_post_ra>
